<compile_context>
chip_gen: v7x
topology: tpu7x:2x2x1
jax: 0.10.0
libtpu: 0.0.40
codegen_flags: <defaults>
</compile_context>

<pallas_src>
import functools

import numpy as np
import jax
import jax.numpy as jnp
from jax.experimental import pallas as pl
from jax.experimental.pallas import tpu as pltpu


# --------------------------------------------------------------------------
# Pallas kernel: fused LayerNorm -> Linear1 -> ReLU -> Linear2 -> residual
# (LayerNorm affine already folded into w1/b1 at parameter-prep time.)
# --------------------------------------------------------------------------
def _simba_block_kernel(x_ref, w1_ref, b1_ref, w2_ref, b2_ref, o_ref, *,
                        eps, compute_dtype):
    # x tile: (tm, D), any float dtype -> compute in f32.
    x = x_ref[...].astype(jnp.float32)

    # ---- LayerNorm statistics: independent reductions (E[x], E[x^2]) ----
    mu = jnp.mean(x, axis=-1, keepdims=True)
    ms = jnp.mean(x * x, axis=-1, keepdims=True)
    var = jnp.maximum(ms - mu * mu, 0.0)
    inv = jax.lax.rsqrt(var + eps)
    ln = (x - mu) * inv                       # affine folded into w1 / b1

    # ---- Linear1 + ReLU: MXU with f32 accumulation ----
    h = jnp.dot(ln.astype(compute_dtype), w1_ref[...],
                preferred_element_type=jnp.float32)
    h = jnp.maximum(h + b1_ref[...], 0.0)

    # ---- Linear2 + residual: f32 epilogue on the accumulator ----
    y = jnp.dot(h.astype(compute_dtype), w2_ref[...],
                preferred_element_type=jnp.float32)
    y = y + b2_ref[...]
    o_ref[...] = (x + y).astype(o_ref.dtype)


# --------------------------------------------------------------------------
# Helpers
# --------------------------------------------------------------------------
def _round_up(n, m):
    return ((n + m - 1) // m) * m


def _vmem_budget_bytes():
    """~80% of per-core VMEM: ~51 MiB on v7x (64 MiB), ~102 MiB on v5e/v6e."""
    try:
        cap = int(pltpu.get_tpu_info().vmem_capacity_bytes)
    except Exception:
        cap = 64 << 20                      # conservative fallback (v7x)
    return int(cap * 0.8)


def _choose_block_rows(M, est_bytes, budget, min_steps=4):
    # Largest tile the VMEM budget allows (halving from 512).
    tm = 512
    while tm > 8 and est_bytes(tm) > budget:
        tm //= 2
    tm = max(8, tm)
    # Keep >= min_steps grid steps when the batch allows it
    # (restores DMA/compute overlap and v7x megacore sharding).
    cap = _round_up(max(8, -(-M // min_steps)), 8)
    tm = min(tm, cap)
    # Snap to an MXU / step-overhead friendly multiple.
    for align in (256, 128, 8):
        if tm >= align:
            tm = (tm // align) * align
            break
    return max(8, tm)


# --------------------------------------------------------------------------
# One-time parameter preparation (hoisted out of the per-call path).
# PyTorch layouts in:  w1 (H, D), b1 (H,), w2 (D_out, H), b2 (D_out,),
#                      gamma/beta (D,).
# Kernel layouts out:  w1 (D, H) with gamma folded in, b1 (1, H) with
#                      beta @ W1^T folded in, w2 (H, D), b2 (1, D).
# --------------------------------------------------------------------------
def prepare_params(params, compute_dtype=jnp.bfloat16):
    gamma, beta = params["ln"]
    w1, b1 = params["fc1"]
    w2, b2 = params["fc2"]

    w1_t = jnp.transpose(w1).astype(jnp.float32)              # (D, H)
    w2_t = jnp.transpose(w2).astype(jnp.float32)               # (H, D)
    # Exact fold of the LN affine into GEMM1:
    #   (xhat*gamma + beta) @ W1^T + b1 == xhat @ (gamma[:,None]*W1^T)
    #                                      + (beta @ W1^T + b1)
    w1_f = gamma.astype(jnp.float32)[:, None] * w1_t
    b1_f = b1.astype(jnp.float32) + beta.astype(jnp.float32) @ w1_t

    return {
        "w1": w1_f.astype(compute_dtype),                      # (D, H)
        "b1": b1_f.reshape(1, -1).astype(jnp.float32),          # (1, H)
        "w2": w2_t.astype(compute_dtype),                       # (H, D)
        "b2": b2.reshape(1, -1).astype(jnp.float32),             # (1, D)
    }


# --------------------------------------------------------------------------
# Fused forward.  x: (B, input_size) -> (B, input_size), same dtype as x.
# --------------------------------------------------------------------------
def simba_block(prepped, x, *, block_rows=None, eps=1e-5):
    M, D = x.shape
    w1, b1, w2, b2 = prepped["w1"], prepped["b1"], prepped["w2"], prepped["b2"]
    H = w1.shape[1]
    assert w1.shape == (D, H), "prepared w1 must be (input_size, hidden)"
    assert w2.shape == (H, D), "SimBaBlock residual requires out_size == input_size"

    compute_dtype = w1.dtype
    x_bytes = jnp.dtype(x.dtype).itemsize
    w_bytes = jnp.dtype(compute_dtype).itemsize

    def est_bytes(tm):
        io = 2 * tm * D * x_bytes * 2                 # double-buffered x + out tiles
        wts = 2 * D * H * w_bytes + (H + D) * 4       # single-buffered weights + biases
        live = tm * (2 * D + H) * 4                   # in-flight f32 intermediates
        return io + wts + live + (2 << 20)            # compiler-scratch slack

    budget = _vmem_budget_bytes()
    if block_rows is not None:
        tm = max(8, _round_up(block_rows, 8))
    else:
        tm = _choose_block_rows(M, est_bytes, budget)

    grid = (pl.cdiv(M, tm),)                          # edge block writes are masked
    vmem_limit = int(min(max(budget, est_bytes(min(tm, M))), 120 << 20))

    kernel = functools.partial(_simba_block_kernel, eps=eps,
                               compute_dtype=compute_dtype)

    return pl.pallas_call(
        kernel,
        out_shape=jax.ShapeDtypeStruct((M, D), x.dtype),
        grid_spec=pltpu.PrefetchScalarGridSpec(
            num_scalar_prefetch=0,
            grid=grid,
            in_specs=[
                # x row tile: pipelined (double-buffered).
                pl.BlockSpec((tm, D), lambda i: (i, 0)),
                # Constant-index operands: VMEM-resident, single-buffered.
                pl.BlockSpec((D, H), lambda i: (0, 0),
                             pipeline_mode=pl.Buffered(1)),
                pl.BlockSpec((1, H), lambda i: (0, 0),
                             pipeline_mode=pl.Buffered(1)),
                pl.BlockSpec((H, D), lambda i: (0, 0),
                             pipeline_mode=pl.Buffered(1)),
                pl.BlockSpec((1, D), lambda i: (0, 0),
                             pipeline_mode=pl.Buffered(1)),
            ],
            out_specs=pl.BlockSpec((tm, D), lambda i: (i, 0)),
        ),
        compiler_params=pltpu.CompilerParams(
            dimension_semantics=("parallel",),        # shard row tiles on v7x
            vmem_limit_bytes=vmem_limit,
        ),
    )(x, w1, b1, w2, b2)


# --------------------------------------------------------------------------
# Parameter init (PyTorch defaults) and pure-JAX reference
# --------------------------------------------------------------------------
def init_params(key, input_size, hidden_size, out_size):
    k1, k2, k3, k4 = jax.random.split(key, 4)
    gamma = jnp.ones((input_size,), jnp.float32)
    beta = jnp.zeros((input_size,), jnp.float32)
    b1_bound = 1.0 / np.sqrt(input_size)
    w1 = jax.random.uniform(k1, (hidden_size, input_size), jnp.float32,
                            -b1_bound, b1_bound)
    b1 = jax.random.uniform(k2, (hidden_size,), jnp.float32, -b1_bound, b1_bound)
    b2_bound = 1.0 / np.sqrt(hidden_size)
    w2 = jax.random.uniform(k3, (out_size, hidden_size), jnp.float32,
                            -b2_bound, b2_bound)
    b2 = jax.random.uniform(k4, (out_size,), jnp.float32, -b2_bound, b2_bound)
    return {"ln": (gamma, beta), "fc1": (w1, b1), "fc2": (w2, b2)}


def reference_forward(params, x, eps=1e-5):
    gamma, beta = params["ln"]
    w1, b1 = params["fc1"]
    w2, b2 = params["fc2"]
    mu = x.mean(-1, keepdims=True)
    var = ((x - mu) ** 2).mean(-1, keepdims=True)
    ln = (x - mu) / jnp.sqrt(var + eps) * gamma + beta
    h = jax.nn.relu(jnp.dot(ln, w1.T, precision=jax.lax.Precision.HIGHEST) + b1)
    y = jnp.dot(h, w2.T, precision=jax.lax.Precision.HIGHEST) + b2
    return x + y


if __name__ == "__main__":
    # Small, lane-friendly feature dims; batch=200 is deliberately NOT a
    # multiple of the chosen row tile so the masked edge block is exercised,
    # and is large enough for a multi-step (pipelined) grid.
    input_size = 128
    hidden_size = 256
    batch = 200

    key = jax.random.PRNGKey(0)
    kx, kp, kg, kb = jax.random.split(key, 4)
    x = jax.random.normal(kx, (batch, input_size), jnp.float32)
    params = init_params(kp, input_size, hidden_size, input_size)
    # Perturb the LN affine so the gamma/beta fold is actually exercised.
    params["ln"] = (1.0 + 0.1 * jax.random.normal(kg, (input_size,), jnp.float32),
                    0.05 * jax.random.normal(kb, (input_size,), jnp.float32))

    # NOTE: bf16 MXU operands (f32 accumulation) by default; pass
    # compute_dtype=jnp.float32 to prepare_params for an fp32-exact path.
    prepped = prepare_params(params, compute_dtype=jnp.bfloat16)

    out = jax.block_until_ready(simba_block(prepped, x))
    assert out.shape == (batch, input_size), out.shape
    assert out.dtype == x.dtype, out.dtype
    assert bool(jnp.all(jnp.isfinite(out)))

    ref = jax.block_until_ready(reference_forward(params, x))
    # bf16 operands with f32 accumulation: loose but meaningful tolerance.
    np.testing.assert_allclose(np.asarray(out), np.asarray(ref),
                               rtol=2e-2, atol=5e-2)

    print("KERNEL_OK")
</pallas_src>

<mosaic_0001>
module attributes {stable_mosaic.version = 11 : i64} {
  func.func @_simba_block_kernel(%arg0: i32, %arg1: memref<56x128xf32, #tpu.memory_space<vmem>>, %arg2: memref<128x256xbf16, #tpu.memory_space<vmem>>, %arg3: memref<1x256xf32, #tpu.memory_space<vmem>>, %arg4: memref<256x128xbf16, #tpu.memory_space<vmem>>, %arg5: memref<1x128xf32, #tpu.memory_space<vmem>>, %arg6: memref<56x128xf32, #tpu.memory_space<vmem>>) attributes {dimension_semantics = [#tpu.dimension_semantics<parallel>], iteration_bounds = array<i64: 4>, scalar_prefetch = 0 : i64, scratch_operands = 0 : i64, tpu.core_type = #tpu.core_type<tc>, window_params = [{transform_indices = @transform_0, window_bounds = array<i64: 56, 128>}, {pipeline_mode = #tpu.pipeline_mode<synchronous>, transform_indices = @transform_1, window_bounds = array<i64: 128, 256>}, {pipeline_mode = #tpu.pipeline_mode<synchronous>, transform_indices = @transform_2, window_bounds = array<i64: 1, 256>}, {pipeline_mode = #tpu.pipeline_mode<synchronous>, transform_indices = @transform_3, window_bounds = array<i64: 256, 128>}, {pipeline_mode = #tpu.pipeline_mode<synchronous>, transform_indices = @transform_4, window_bounds = array<i64: 1, 128>}, {transform_indices = @transform_5, window_bounds = array<i64: 56, 128>}]} {
    %c0 = arith.constant 0 : index
    %c0_0 = arith.constant 0 : index
    %0 = vector.load %arg1[%c0, %c0_0] : memref<56x128xf32, #tpu.memory_space<vmem>>, vector<56x128xf32>
    %cst = arith.constant dense<0.000000e+00> : vector<56xf32>
    %1 = vector.multi_reduction <add>, %0, %cst [1] : vector<56x128xf32> to vector<56xf32>
    %2 = vector.shape_cast %1 : vector<56xf32> to vector<56x1xf32>
    %cst_1 = arith.constant 1.280000e+02 : f32
    %3 = vector.broadcast %cst_1 : f32 to vector<56x1xf32>
    %4 = arith.divf %2, %3 : vector<56x1xf32>
    %5 = arith.mulf %0, %0 : vector<56x128xf32>
    %cst_2 = arith.constant dense<0.000000e+00> : vector<56xf32>
    %6 = vector.multi_reduction <add>, %5, %cst_2 [1] : vector<56x128xf32> to vector<56xf32>
    %7 = vector.shape_cast %6 : vector<56xf32> to vector<56x1xf32>
    %cst_3 = arith.constant 1.280000e+02 : f32
    %8 = vector.broadcast %cst_3 : f32 to vector<56x1xf32>
    %9 = arith.divf %7, %8 : vector<56x1xf32>
    %10 = arith.mulf %4, %4 : vector<56x1xf32>
    %11 = arith.subf %9, %10 : vector<56x1xf32>
    %cst_4 = arith.constant 0.000000e+00 : f32
    %12 = vector.broadcast %cst_4 : f32 to vector<56x1xf32>
    %13 = arith.maximumf %11, %12 : vector<56x1xf32>
    %cst_5 = arith.constant 9.99999974E-6 : f32
    %14 = vector.broadcast %cst_5 : f32 to vector<56x1xf32>
    %15 = arith.addf %13, %14 : vector<56x1xf32>
    %16 = math.rsqrt %15 : vector<56x1xf32>
    %17 = vector.broadcast %4 : vector<56x1xf32> to vector<56x128xf32>
    %18 = arith.subf %0, %17 : vector<56x128xf32>
    %19 = vector.broadcast %16 : vector<56x1xf32> to vector<56x128xf32>
    %20 = arith.mulf %18, %19 : vector<56x128xf32>
    %21 = arith.truncf %20 : vector<56x128xf32> to vector<56x128xbf16>
    %c0_6 = arith.constant 0 : index
    %c0_7 = arith.constant 0 : index
    %22 = vector.load %arg2[%c0_6, %c0_7] : memref<128x256xbf16, #tpu.memory_space<vmem>>, vector<128x256xbf16>
    %cst_8 = arith.constant dense<0.000000e+00> : vector<56x256xf32>
    %23 = tpu.matmul %21, %22, %cst_8 {dimension_numbers = #tpu.dot_dimension_numbers<[1], [0], [0], [1], [0, 0, 1, 1], [], []>} : vector<56x128xbf16>, vector<128x256xbf16>, vector<56x256xf32> -> vector<56x256xf32>
    %c0_9 = arith.constant 0 : index
    %c0_10 = arith.constant 0 : index
    %24 = vector.load %arg3[%c0_9, %c0_10] : memref<1x256xf32, #tpu.memory_space<vmem>>, vector<1x256xf32>
    %25 = vector.broadcast %24 : vector<1x256xf32> to vector<56x256xf32>
    %26 = arith.addf %23, %25 : vector<56x256xf32>
    %cst_11 = arith.constant 0.000000e+00 : f32
    %27 = vector.broadcast %cst_11 : f32 to vector<56x256xf32>
    %28 = arith.maximumf %26, %27 : vector<56x256xf32>
    %29 = arith.truncf %28 : vector<56x256xf32> to vector<56x256xbf16>
    %c0_12 = arith.constant 0 : index
    %c0_13 = arith.constant 0 : index
    %30 = vector.load %arg4[%c0_12, %c0_13] : memref<256x128xbf16, #tpu.memory_space<vmem>>, vector<256x128xbf16>
    %cst_14 = arith.constant dense<0.000000e+00> : vector<56x128xf32>
    %31 = tpu.matmul %29, %30, %cst_14 {dimension_numbers = #tpu.dot_dimension_numbers<[1], [0], [0], [1], [0, 0, 1, 1], [], []>} : vector<56x256xbf16>, vector<256x128xbf16>, vector<56x128xf32> -> vector<56x128xf32>
    %c0_15 = arith.constant 0 : index
    %c0_16 = arith.constant 0 : index
    %32 = vector.load %arg5[%c0_15, %c0_16] : memref<1x128xf32, #tpu.memory_space<vmem>>, vector<1x128xf32>
    %33 = vector.broadcast %32 : vector<1x128xf32> to vector<56x128xf32>
    %34 = arith.addf %31, %33 : vector<56x128xf32>
    %35 = arith.addf %0, %34 : vector<56x128xf32>
    %c0_17 = arith.constant 0 : index
    %c0_18 = arith.constant 0 : index
    %36 = vector.load %arg6[%c0_17, %c0_18] : memref<56x128xf32, #tpu.memory_space<vmem>>, vector<56x128xf32>
    tpu.vector_store %arg6[%c0_17, %c0_18], %35 {strides = array<i32>} : memref<56x128xf32, #tpu.memory_space<vmem>>, vector<56x128xf32>,
    return
  }
  func.func @transform_0(%arg0: i32) -> (i32, i32) {
    %c0_i32 = arith.constant 0 : i32
    %c0_i32_0 = arith.constant 0 : i32
    return %arg0, %c0_i32 : i32, i32
  }
  func.func @transform_1(%arg0: i32) -> (i32, i32) {
    %c0_i32 = arith.constant 0 : i32
    %c0_i32_0 = arith.constant 0 : i32
    %c0_i32_1 = arith.constant 0 : i32
    return %c0_i32, %c0_i32_0 : i32, i32
  }
  func.func @transform_2(%arg0: i32) -> (i32, i32) {
    %c0_i32 = arith.constant 0 : i32
    %c0_i32_0 = arith.constant 0 : i32
    %c0_i32_1 = arith.constant 0 : i32
    return %c0_i32, %c0_i32_0 : i32, i32
  }
  func.func @transform_3(%arg0: i32) -> (i32, i32) {
    %c0_i32 = arith.constant 0 : i32
    %c0_i32_0 = arith.constant 0 : i32
    %c0_i32_1 = arith.constant 0 : i32
    return %c0_i32, %c0_i32_0 : i32, i32
  }
  func.func @transform_4(%arg0: i32) -> (i32, i32) {
    %c0_i32 = arith.constant 0 : i32
    %c0_i32_0 = arith.constant 0 : i32
    %c0_i32_1 = arith.constant 0 : i32
    return %c0_i32, %c0_i32_0 : i32, i32
  }
  func.func @transform_5(%arg0: i32) -> (i32, i32) {
    %c0_i32 = arith.constant 0 : i32
    %c0_i32_0 = arith.constant 0 : i32
    return %arg0, %c0_i32 : i32, i32
  }
}

</mosaic_0001>

<bundles_post_ra>
// kernel: tpu_custom_call.1
= control target key start
LH: loop header
LB: loop body
LE: loop exit
PB: predicated region body
PF: predicated region fallthrough
CT: control target
= control target key end

     0   :  { %10 = vsyncpa [#allocation3], 0  ;;  %s1668_s0 = inlined_call_operand.hbm [shape: f32[200,128], index: 0, kind: input, shape index: {}]   ;;  %s1669_s1 = inlined_call_operand.hbm [shape: bf16[128,256], index: 1, kind: input, shape index: {}]   ;;  %s1670_s2 = inlined_call_operand.vmem [shape: f32[1,256], index: 2, kind: input, shape index: {}]   ;;  %s1671_s3 = inlined_call_operand.hbm [shape: bf16[256,128], index: 3, kind: input, shape index: {}]   ;;  %s1672_s4 = inlined_call_operand.vmem [shape: f32[1,128], index: 4, kind: input, shape index: {}]   ;;  %s1673_s5 = inlined_call_operand.hbm [shape: f32[200,128], index: 5, kind: output, shape index: {}]  }
   0x1   :  { %12 = vsyncpa [#allocation3 + $0x1], 0 }
   0x2   :  { %13 = vsyncpa [#allocation6], 0 }
   0x3   :  { %14 = vsyncpa [#allocation4], 0 }
   0x4   :  { %16 = vsyncpa [#allocation4 + $0x1], 0  ;;  %s1344_s18 = smov 0   ;;  %s1346_s19 = smov 0  }
   0x5   :  { %s1348_s20 = smov 0   ;;  %s1350_s21 = smov 0  }
   0x6 LB: > { %s1365_s22 = sadd.s32 4294967295, %s1299_s21   ;;  %s925_s23 = sadd.s32 4294967294, %s1299_s21   ;;  %s1299_s21 = sphi %s1350_s21, %s1695_s21   ;;  %s1295_s20 = sphi %s1348_s20, %s1694_s20   ;;  %s1291_s19 = sphi %s1346_s19, %s1693_s19   ;;  %s1287_s18 = sphi %s1344_s18, %s1692_s18  }
   0x7   : > { %s1369_s24 = sadd.s32 1, %s1299_s21   ;;  %s29_s25 = sadd.s32 1, %s1295_s20 }
   0x8   : > { %s26_s26 = ssub.s32 %s1299_s21, %s1369_s24  ;;  %p36_p0 = scmp.ne.s32.totalorder %s1295_s20, %s1291_s19 }
   0x9   : > { %p27_p1 = scmp.eq.s32.totalorder %s26_s26, 0  ;;  %p37_p2 = scmp.eq.s32.totalorder %s1299_s21, 0 }
   0xa   : > { %p42_p3 = scmp.ne.s32.totalorder %s1291_s19, %s1287_s18  ;;  %p1674_p4 = scmp.eq.s32.totalorder %s1365_s22, 0 }
   0xb   : > { %s1381_s27 = scalar_select %p27_p1, %s1295_s20, %s29_s25  }
   0xc   : > { %p1383_p5 = por %p37_p2, %p36_p0  ;;  %p1389_p6 = por %p1674_p4, %p42_p3 }
   0xd   : > { %1677 = sst [smem:[#allocation12_spill]] %s1381_s27  ;;  %p150_p7 = scmp.eq.s32.totalorder %s1365_s22, 3 }
   0xe   : > { %s1678_s28 = scalar_select %p1383_p5, 1, 0 }
   0xf   : > { %s1679_s29 = scalar_select %p1389_p6, 1, 0 }
  0x10   : > { %p156_p8 = scmp.eq.s32.totalorder %s925_s23, 3  ;;  %p926_p9 = scmp.ge.s32.totalorder %s1299_s21, 1 }
  0x11   : > { %p163_p10 = scmp.lt.s32.totalorder %s1299_s21, 5  ;;  %p1396_p11 = por %p150_p7, %p36_p0 }
  0x12   : > { %p1400_p12 = por %p156_p8, %p42_p3  ;;  %s1301_s8 = smov [#allocation5]  }
  0x13   : > { %s1680_s30 = scalar_select %p1396_p11, 1, 0 }
  0x14   : > { %s1681_s6 = scalar_select %p1400_p12, 1, 0 }
  0x15   : > { %p1404_p13 = pnand %p926_p9, %p163_p10  ;;  %s175_s9 = sshll.u32 %s1301_s8, 4  ;;  %s176_s9 = int_to_ptr.vmem [resolvable:$true] %s175_s9 }
  0x16   : > { %s1302_s11 = smov [#allocation7]   ;;  %s1145_s15 = scalar_lea.hbm %s1669_s1, 2048 }
  0x17   : > { %s1682_s7 = scalar_select %p1404_p13, 1, 0 }
  0x18   : > { %p1032_p1 = pneg %p1404_p13  ;;  %s191_s12 = sshll.u32 %s1302_s11, 4  ;;  %s1416_s12 = int_to_ptr.vmem [resolvable:$true] %s191_s12 }
  0x19   : > { %p1146_p0 = scmp.ne.s32.totalorder %s1669_s1, %s1145_s15  ;;  %p1152_p9 = scmp.lt.u32.totalorder %s1145_s15, %s1669_s1 }
  0x1a   : > { %p1412_p2 = pnand %p1032_p1, %p1674_p4 }
  0x1c   : > { %p1147_p3 = pneg %p1412_p2 }
  0x1e   : > { %p1148_p7 = pnand %p1147_p3, %p1146_p0 }
  0x20   : > { %p1149_p8 = pneg %p1148_p7 }
  0x22   : > { %p1154_p10 = pnand %p1152_p9, %p1149_p8 }
  0x24   : > { %1157 = shalt.err (!%p1154_p10)
}
  0x25   : > { %s1158_s26 = scalar_lea.vmem %s176_s9, 2048  ;;  %p1166_p11 = scmp.lt.s32.totalorder %s176_s9, %s176_s9 }
  0x26   : > { %p1159_p1 = scmp.ne.s32.totalorder %s176_s9, %s1158_s26  ;;  %p1167_p6 = scmp.lt.s32.totalorder %s1158_s26, %s1158_s26 }
  0x28   : > { %p1161_p4 = pnand %p1159_p1, %p1147_p3  ;;  %p1168_p13 = por %p1167_p6, %p1166_p11 }
  0x2a   : > { %p1162_p12 = pneg %p1161_p4 }
  0x2c   : > { %p1169_p5 = pnand %p1168_p13, %p1162_p12 }
  0x2e   : > { %1172 = shalt.err (!%p1169_p5)
}
  0x2f   : > { %s1303_s8 = smov 128   ;;  %s1304_s11 = smov 8  }
  0x30   : > { %1035 = dma.hbm_to_vmem [thread:$0]  (!%p1412_p2), %s1669_s1, 2048, %s176_s9, [#allocation6], %s1303_s8, %s1303_s8, %s1304_s11  }
  0x31   : > { %s1173_s17 = scalar_lea.hbm %s1671_s3, 2048 }
  0x32   : > { %p1174_p4 = scmp.ne.s32.totalorder %s1671_s3, %s1173_s17  ;;  %p1180_p11 = scmp.lt.u32.totalorder %s1173_s17, %s1671_s3 }
  0x34   : > { %p1176_p5 = pnand %p1174_p4, %p1147_p3 }
  0x36   : > { %p1177_p6 = pneg %p1176_p5 }
  0x38   : > { %p1182_p12 = pnand %p1180_p11, %p1177_p6 }
  0x3a   : > { %1185 = shalt.err (!%p1182_p12)
}
  0x3b   : > { %s1186_s9 = scalar_lea.vmem %s1416_s12, 2048  ;;  %p1194_p8 = scmp.lt.s32.totalorder %s1416_s12, %s1416_s12 }
  0x3c   : > { %p1187_p13 = scmp.ne.s32.totalorder %s1416_s12, %s1186_s9  ;;  %p1195_p9 = scmp.lt.s32.totalorder %s1186_s9, %s1186_s9 }
  0x3e   : > { %p1189_p0 = pnand %p1187_p13, %p1147_p3  ;;  %p1196_p10 = por %p1195_p9, %p1194_p8 }
  0x40   : > { %p1190_p7 = pneg %p1189_p0 }
  0x42   : > { %p1197_p1 = pnand %p1196_p10, %p1190_p7 }
  0x44   : > { %1200 = shalt.err (!%p1197_p1)
}
  0x45   : > { %s1305_s27 = smov 64   ;;  %s1306_s8 = smov 4  }
  0x46   : > { %1038 = dma.hbm_to_vmem [thread:$0]  (!%p1412_p2), %s1671_s3, 2048, %s1416_s12, [#allocation6], %s1305_s27, %s1305_s27, %s1306_s8  }
  0x47   : > { %p929_p4 = scmp.ge.s32.totalorder %s1299_s21, 4 }
  0x48   : > { %p1684_p3 = scmp.ne.s32.totalorder (!%p929_p4), %s1678_s28, 0 }
  0x49   : > { %204 = sbr.rel (%p929_p4) target bundleno = 115 (0x73), region = 32 }
  0x50   : > { %207 = sbr.rel (!%p1684_p3) target bundleno = 115 (0x73), region = 36  ;;  %s208_s14 = sand.u32 (%p1684_p3), 1, %s1295_s20  }
  0x51   : > { %s213_s15 = smul.u32 (%p1684_p3), 7, %s1299_s21  ;;  %s1473_s25 = scalar_lea.sflag (%p1684_p3), [#allocation3], %s208_s14 }
  0x52   : > { %s1020_s16 = smul.u32 (%p1684_p3), 56, %s208_s14 }
  0x53   : > { %s214_s17 = ssub.s32 (%p1684_p3), 25, %s213_s15 }
  0x54   : > { %p215_p5 = scmp.lt.s32.totalorder (%p1684_p3), %s214_s17, 7  ;;  %s212_s12 = scalar_lea.vmem (%p1684_p3), [#allocation2], %s1020_s16 }
  0x57   : > { %s1697_s17 = smov (!%p215_p5, %s214_s17), 7 }
  0x58   : > { %s1470_s23 = sshll.u32 %s1697_s17, 7 }
  0x59   : > { %s219_s10 = ssub.s32 896, %s1470_s23 }
  0x5a   : > { %220 = vsyncadd %s1473_s25, %s219_s10  ;;  %p931_p2 = scmp.ne.s32.totalorder %s1470_s23, 0  ;;  %s978_s28 = smul.u32 896, %s1299_s21 }
  0x5b   : > { %s225_s26 = sshll.u32 %s212_s12, 4  ;;  %s1205_s15 = scalar_lea.hbm %s1668_s0, 3200  ;;  %s1483_s26 = int_to_ptr.vmem [resolvable:$true] %s225_s26 }
  0x5c   : > { %s1481_s8 = scalar_lea.hbm %s1668_s0, %s978_s28 }
  0x5d   : > { %s1201_s11 = scalar_lea.hbm %s1481_s8, %s1470_s23  ;;  %p1206_p13 = scmp.lt.u32.totalorder %s1481_s8, %s1668_s0 }
  0x5e   : > { %p1202_p6 = scmp.ne.s32.totalorder %s1481_s8, %s1201_s11  ;;  %p1207_p0 = scmp.lt.u32.totalorder %s1205_s15, %s1201_s11 }
  0x5f   : > { %p1209_p8 = scmp.lt.u32.totalorder %s1201_s11, %s1481_s8 }
  0x60   : > { %p1203_p11 = pnand %p1202_p6, %p931_p2  ;;  %p1208_p7 = por %p1207_p0, %p1206_p13 }
  0x62   : > { %p1204_p12 = pneg %p1203_p11  ;;  %p1210_p9 = por %p1209_p8, %p1208_p7 }
  0x64   : > { %p1211_p10 = pnand %p1210_p9, %p1204_p12 }
  0x66   : > { %1214 = shalt.err (!%p1211_p10)
}
  0x67   : > { %s1215_s10 = scalar_lea.vmem %s1483_s26, %s1470_s23  ;;  %s1307_s12 = smov [#allocation2]  }
  0x68   : > { %p1216_p1 = scmp.ne.s32.totalorder %s1483_s26, %s1215_s10  ;;  %s1219_s28 = sshll.u32 %s1307_s12, 4  ;;  %s1220_s28 = int_to_ptr.vmem [resolvable:$false] %s1219_s28 }
  0x69   : > { %s1221_s9 = scalar_lea.vmem %s1220_s28, 1792  ;;  %p1222_p5 = scmp.lt.s32.totalorder %s1483_s26, %s1220_s28 }
  0x6a   : > { %p1217_p4 = pnand %p1216_p1, %p931_p2  ;;  %p1223_p6 = scmp.lt.s32.totalorder %s1221_s9, %s1215_s10 }
  0x6c   : > { %p1218_p3 = pneg %p1217_p4  ;;  %p1224_p11 = por %p1223_p6, %p1222_p5 }
  0x6e   : > { %p1225_p13 = pnand %p1224_p11, %p1218_p3 }
  0x70   : > { %1228 = shalt.err (!%p1225_p13)
}
  0x71   : > { %s1308_s27 = smov 128   ;;  %s1309_s11 = smov 8  }
  0x72   : > { %231 = dma.hbm_to_vmem [thread:$0]  (%p931_p2), %s1481_s8, %s1470_s23, %s1483_s26, %s1473_s25, %s1308_s27, %s1308_s27, %s1309_s11  }
  0x73 PF: > { %p1685_p12 = scmp.ne.s32.totalorder %s1682_s7, 0 }
  0x74   : > { %s1513_s13 = sand.u32 (!%p1685_p12), 1, %s1291_s19   ;;  %p1686_p0 = scmp.ne.s32.totalorder (!%p1685_p12), %s1679_s29, 0 }
  0x75   : > { %237 = sbr.rel (%p1685_p12) target bundleno = 794 (0x31a), region = 40  ;;  %s240_s15 = scalar_lea.sflag (!%p1685_p12), [#allocation3], %s1513_s13 }
  0x76   : > { %s1021_s14 = smul.u32 (!%p1685_p12), 56, %s1513_s13 }
  0x78   : > { %s1519_s16 = scalar_lea.vmem (!%p1685_p12), [#allocation2], %s1021_s14 }
  0x7c   : > { %1274 = dma.done.wait (%p1686_p0), %s240_s15, 896  }
  0x7d   : > { %1276 = vsyncadd (%p1686_p0), %s240_s15, 4294966400  ;;  %p1687_p2 = scmp.eq.s32.totalorder %s1365_s22, 0 }
  0x7f   : > { %1278 = dma.done.wait (%p1687_p2), [#allocation6], 4096   ;;  %p1688_p7 = pmov %p1687_p2 }
  0x80   : > { %v1530_v0 = vld [vmem:[%s1519_s16] sm:$0xff]  ;;  %v1533_v1 = vld [vmem:[%s1519_s16 + $0x8] sm:$0xff]  ;;  %v1541_v6 = vld [vmem:[%s1519_s16 + $0x10] sm:$0xff]  ;;  %v1310_v30 = vmov 0   ;;  %s1591_s26 = scalar_lea.vmem [#allocation8], %s1021_s14  ;;  %s814_s8 = scalar_lea.sflag [#allocation4], %s1513_s13 }
  0x81   : > { %1280 = vsyncadd (%p1688_p7), [#allocation6], 4294963200  ;;  %296 = vadd.xlane.f32.xlu0 %v1530_v0  ;;  %v318_v2 = vmul.f32 %v1530_v0, %v1530_v0  ;;  %v319_v3 = vmul.f32 %v1533_v1, %v1533_v1  ;;  %v1091_v4 = vld [vmem:[#allocation5 + $0x4] ss:$8 sps:$4 sm:$0xff]   ;;  %v1093_v5 = vld [vmem:[#allocation5] ss:$8 sps:$4 sm:$0xff]   ;;  %v320_v8 = vmul.f32 %v1541_v6, %v1541_v6  ;;  %539 = vmatprep.mubr.bf16.mxu0 %v1310_v30 }
  0x82   : > { %507 = vmatprep.subr.bf16.mxu0 %v1091_v4  ;;  %v1545_v7 = vld [vmem:[%s1519_s16 + $0x18] sm:$0xff]  ;;  %v1554_v10 = vld [vmem:[%s1519_s16 + $0x20] sm:$0xff]  ;;  %v1557_v11 = vld [vmem:[%s1519_s16 + $0x28] sm:$0xff]  ;;  %p1689_p8 = scmp.ne.s32.totalorder %s1680_s30, 0 }
  0x83   : > { %325 = vadd.xlane.f32.xlu1 %v318_v2  ;;  %508 = vmatpush1.bf16.msra.mxu0 %v1093_v5  ;;  %v321_v9 = vmul.f32 %v1545_v7, %v1545_v7  ;;  %v1094_v12 = vld [vmem:[#allocation5 + $0x14] ss:$8 sps:$4 sm:$0xff]   ;;  %v1096_v13 = vld [vmem:[#allocation5 + $0x10] ss:$8 sps:$4 sm:$0xff]   ;;  %v322_v14 = vmul.f32 %v1554_v10, %v1554_v10  ;;  %v1097_v15 = vld [vmem:[#allocation5 + $0x24] ss:$8 sps:$4 sm:$0xff]   ;;  %v323_v16 = vmul.f32 %v1557_v11, %v1557_v11 }
  0x84   : > { %509 = vmatprep.subr.bf16.mxu0 %v1094_v12  ;;  %v1099_v17 = vld [vmem:[#allocation5 + $0x20] ss:$8 sps:$4 sm:$0xff]   ;;  %v1100_v19 = vld [vmem:[#allocation5 + $0x34] ss:$8 sps:$4 sm:$0xff]   ;;  %v1102_v21 = vld [vmem:[#allocation5 + $0x30] ss:$8 sps:$4 sm:$0xff]  }
  0x85   : > { %298 = vadd.xlane.f32.xlu0 %v1533_v1  ;;  %v1566_v18 = vld [vmem:[%s1519_s16 + $0x30] sm:$0xff]  ;;  %v1117_v33 = vld [vmem:[#allocation7 + $0x48] sm:$0xff]   ;;  %v1119_v35 = vld [vmem:[#allocation7 + $0x50] sm:$0xff]   ;;  %s821_s17 = smul.u32 (%p1689_p8), 7, %s1365_s22 }
  0x86   : > { %v324_v20 = vmul.f32 %v1566_v18, %v1566_v18  ;;  %v1103_v22 = vld [vmem:[#allocation5 + $0x44] ss:$8 sps:$4 sm:$0xff]   ;;  %v1105_v23 = vld [vmem:[#allocation5 + $0x40] ss:$8 sps:$4 sm:$0xff]   ;;  %v1106_v24 = vld [vmem:[#allocation5 + $0x54] ss:$8 sps:$4 sm:$0xff]  }
  0x87   : > { %327 = vadd.xlane.f32.xlu1 %v319_v3  ;;  %510 = vmatpush1.bf16.msra.mxu0 %v1096_v13  ;;  %v1108_v25 = vld [vmem:[#allocation5 + $0x50] ss:$8 sps:$4 sm:$0xff]   ;;  %v1109_v26 = vld [vmem:[#allocation5 + $0x64] ss:$8 sps:$4 sm:$0xff]   ;;  %v1111_v27 = vld [vmem:[#allocation5 + $0x60] ss:$8 sps:$4 sm:$0xff]  }
  0x88   : > { %511 = vmatprep.subr.bf16.mxu0 %v1097_v15  ;;  %v1112_v28 = vld [vmem:[#allocation5 + $0x74] ss:$8 sps:$4 sm:$0xff]   ;;  %v1114_v29 = vld [vmem:[#allocation5 + $0x70] ss:$8 sps:$4 sm:$0xff]   ;;  %v1115_v31 = vld [vmem:[#allocation7 + $0x40] sm:$0xff]   ;;  %s822_s10 = ssub.s32 (%p1689_p8), 25, %s821_s17 }
  0x89   : > { %300 = vadd.xlane.f32.xlu0 %v1541_v6  ;;  %v1116_v32 = vld [vmem:[#allocation7] sm:$0xff]   ;;  %980 = vmatprep.subr.bf16.mxu1 %v1115_v31  ;;  %v1118_v34 = vld [vmem:[#allocation7 + $0x8] sm:$0xff]   ;;  %v1120_v36 = vld [vmem:[#allocation7 + $0x10] sm:$0xff]   ;;  %p823_p9 = scmp.lt.s32.totalorder (%p1689_p8), %s822_s10, 7 }
  0x8a   : > { %981 = vmatpush3.bf16.msra.mxu1 %v1116_v32  ;;  %v1121_v37 = vld [vmem:[#allocation7 + $0x58] sm:$0xff]   ;;  %v1123_v39 = vld [vmem:[#allocation7 + $0x60] sm:$0xff]   ;;  %v1125_v41 = vld [vmem:[#allocation7 + $0x68] sm:$0xff]  }
  0x8b   : > { %302 = vadd.xlane.f32.xlu1 %v1545_v7  ;;  %512 = vmatpush1.bf16.msra.mxu0 %v1099_v17  ;;  %v1122_v38 = vld [vmem:[#allocation7 + $0x18] sm:$0xff]   ;;  %v1124_v40 = vld [vmem:[#allocation7 + $0x20] sm:$0xff]  }
  0x8c   : > { %513 = vmatprep.subr.bf16.mxu0 %v1100_v19  ;;  %982 = vmatprep.subr.bf16.mxu1 %v1117_v33 }
  0x8d   : > { %329 = vadd.xlane.f32.xlu0 %v320_v8 }
  0x8e   : > { %983 = vmatpush3.bf16.msra.mxu1 %v1118_v34 }
  0x8f   : > { %331 = vadd.xlane.f32.xlu1 %v321_v9  ;;  %514 = vmatpush1.bf16.msra.mxu0 %v1102_v21 }
  0x90   : > { %515 = vmatprep.subr.bf16.mxu0 %v1103_v22  ;;  %984 = vmatprep.subr.bf16.mxu1 %v1119_v35 }
  0x91   : > { %304 = vadd.xlane.f32.xlu0 %v1554_v10 }
  0x92   : > { %985 = vmatpush3.bf16.msra.mxu1 %v1120_v36 }
  0x93   : > { %306 = vadd.xlane.f32.xlu1 %v1557_v11  ;;  %516 = vmatpush1.bf16.msra.mxu0 %v1105_v23 }
  0x94   : > { %517 = vmatprep.subr.bf16.mxu0 %v1106_v24  ;;  %986 = vmatprep.subr.bf16.mxu1 %v1121_v37 }
  0x95   : > { %333 = vadd.xlane.f32.xlu0 %v322_v14 }
  0x96   : > { %987 = vmatpush3.bf16.msra.mxu1 %v1122_v38 }
  0x97   : > { %335 = vadd.xlane.f32.xlu1 %v323_v16  ;;  %518 = vmatpush1.bf16.msra.mxu0 %v1108_v25 }
  0x98   : > { %519 = vmatprep.subr.bf16.mxu0 %v1109_v26  ;;  %988 = vmatprep.subr.bf16.mxu1 %v1123_v39 }
  0x99   : > { %308 = vadd.xlane.f32.xlu0 %v1566_v18 }
  0x9a   : > { %989 = vmatpush3.bf16.msra.mxu1 %v1124_v40 }
  0x9b   : > { %337 = vadd.xlane.f32.xlu1 %v324_v20  ;;  %520 = vmatpush1.bf16.msra.mxu0 %v1111_v27 }
  0x9c   : > { %521 = vmatprep.subr.bf16.mxu0 %v1112_v28  ;;  %990 = vmatprep.subr.bf16.mxu1 %v1125_v41 }
  0x9f   : > { %522 = vmatpush1.bf16.msra.mxu0 %v1114_v29 }
 0x10e   : > { %v297_v42 = vpop.xlane.xlu0 %296 }
 0x10f   : > { %v311_v43 = vmul.f32 0.0078125, %v297_v42 }
 0x110   : > { %v326_v44 = vpop.xlane.xlu1 %325 }
 0x111   : > { %v346_v45 = vmul.f32 %v311_v43, %v311_v43  ;;  %v339_v46 = vmul.f32 0.0078125, %v326_v44  ;;  %v381_v29 = vsub.f32 %v1530_v0, %v311_v43 }
 0x112   : > { %v299_v47 = vpop.xlane.xlu0 %298 }
 0x113   : > { %v353_v48 = vsub.f32 %v339_v46, %v346_v45  ;;  %v312_v49 = vmul.f32 0.0078125, %v299_v47 }
 0x114   : > { %v328_v50 = vpop.xlane.xlu1 %327 }
 0x115   : > { %v360_v51 = vmax.f32 %v353_v48, 0.0  ;;  %v347_v52 = vmul.f32 %v312_v49, %v312_v49  ;;  %v340_v53 = vmul.f32 0.0078125, %v328_v50  ;;  %v382_v31 = vsub.f32 %v1533_v1, %v312_v49 }
 0x116   : > { %v301_v54 = vpop.xlane.xlu0 %300 }
 0x117   : > { %v367_v55 = vadd.f32 1e-05, %v360_v51  ;;  %v354_v56 = vsub.f32 %v340_v53, %v347_v52  ;;  %v313_v57 = vmul.f32 0.0078125, %v301_v54 }
 0x118   : > { %v303_v58 = vpop.xlane.xlu1 %302 }
 0x119   : > { %v361_v59 = vmax.f32 %v354_v56, 0.0  ;;  %v348_v60 = vmul.f32 %v313_v57, %v313_v57  ;;  %v314_v61 = vmul.f32 0.0078125, %v303_v58  ;;  %1131 = vrsqrt.f32 %v367_v55 }
 0x11a   : > { %v330_v62 = vpop.xlane.xlu0 %329  ;;  %v383_v48 = vsub.f32 %v1541_v6, %v313_v57 }
 0x11b   : > { %v368_v63 = vadd.f32 1e-05, %v361_v59  ;;  %v341_v2 = vmul.f32 0.0078125, %v330_v62  ;;  %v349_v4 = vmul.f32 %v314_v61, %v314_v61  ;;  %v384_v49 = vsub.f32 %v1545_v7, %v314_v61 }
 0x11c   : > { %v332_v3 = vpop.xlane.xlu1 %331 }
 0x11d   : > { %1133 = vrsqrt.f32 %v368_v63  ;;  %v355_v5 = vsub.f32 %v341_v2, %v348_v60  ;;  %v342_v8 = vmul.f32 0.0078125, %v332_v3 }
 0x11e   : > { %v305_v9 = vpop.xlane.xlu0 %304 }
 0x11f   : > { %v362_v12 = vmax.f32 %v355_v5, 0.0  ;;  %v356_v13 = vsub.f32 %v342_v8, %v349_v4  ;;  %v315_v14 = vmul.f32 0.0078125, %v305_v9  ;;  %v1126_v5 = vld [vmem:[#allocation7 + $0x28] sm:$0xff]   ;;  %v1127_v8 = vld [vmem:[#allocation7 + $0x70] sm:$0xff]  }
 0x120   : > { %v307_v15 = vpop.xlane.xlu1 %306  ;;  %991 = vmatpush3.bf16.msra.mxu1 %v1126_v5  ;;  %v1128_v9 = vld [vmem:[#allocation7 + $0x30] sm:$0xff]  }
 0x121   : > { %v369_v16 = vadd.f32 1e-05, %v362_v12  ;;  %v363_v17 = vmax.f32 %v356_v13, 0.0  ;;  %v350_v19 = vmul.f32 %v315_v14, %v315_v14  ;;  %v316_v20 = vmul.f32 0.0078125, %v307_v15  ;;  %992 = vmatprep.subr.bf16.mxu1 %v1127_v8  ;;  %v1129_v12 = vld [vmem:[#allocation7 + $0x78] sm:$0xff]  }
 0x122   : > { %v334_v21 = vpop.xlane.xlu0 %333  ;;  %v385_v58 = vsub.f32 %v1554_v10, %v315_v14  ;;  %v1130_v13 = vld [vmem:[#allocation7 + $0x38] sm:$0xff]   ;;  %v417_v14 = vlaneseq }
 0x123   : > { %1135 = vrsqrt.f32 %v369_v16  ;;  %v370_v22 = vadd.f32 1e-05, %v363_v17  ;;  %v343_v23 = vmul.f32 0.0078125, %v334_v21  ;;  %v1132_v25 = vpop.eup %1131  ;;  %v351_v26 = vmul.f32 %v316_v20, %v316_v20 }
 0x124   : > { %v336_v24 = vpop.xlane.xlu1 %335  ;;  %v388_v38 = vmul.f32 %v1132_v25, %v381_v29  ;;  %v386_v59 = vsub.f32 %v1557_v11, %v316_v20  ;;  %993 = vmatpush3.bf16.msra.mxu1 %v1128_v9  ;;  %v418_v15 = vshrl.u32 %v417_v14, 7 }
 0x125   : > { %1137 = vrsqrt.f32 %v370_v22  ;;  %v357_v27 = vsub.f32 %v343_v23, %v350_v19  ;;  %v344_v28 = vmul.f32 0.0078125, %v336_v24  ;;  %994 = vmatprep.subr.bf16.mxu1 %v1129_v12 }
 0x126   : > { %v309_v32 = vpop.xlane.xlu0 %308  ;;  %v419_v16 = vsub.s32 0, %v418_v15  ;;  %v423_v17 = vsub.s32 1, %v418_v15 }
 0x127   : > { %v1134_v33 = vpop.eup %1133  ;;  %v364_v34 = vmax.f32 %v357_v27, 0.0  ;;  %v358_v35 = vsub.f32 %v344_v28, %v351_v26  ;;  %v317_v36 = vmul.f32 0.0078125, %v309_v32 }
 0x128   : > { %v338_v37 = vpop.xlane.xlu1 %337  ;;  %v389_v39 = vmul.f32 %v1134_v33, %v382_v31  ;;  %995 = vmatpush3.bf16.msra.mxu1 %v1130_v13 }
 0x129   : > { %v371_v40 = vadd.f32 1e-05, %v364_v34  ;;  %v365_v41 = vmax.f32 %v358_v35, 0.0  ;;  %v352_v42 = vmul.f32 %v317_v36, %v317_v36  ;;  %v345_v44 = vmul.f32 0.0078125, %v338_v37 }
 0x12a   : > { %v395_v45 = vpack.c.bf16 %v389_v39, %v388_v38  ;;  %v387_v2 = vsub.f32 %v1566_v18, %v317_v36 }
 0x12b   : > { %1139 = vrsqrt.f32 %v371_v40  ;;  %v372_v46 = vadd.f32 1e-05, %v365_v41  ;;  %v359_v47 = vsub.f32 %v345_v44, %v352_v42 }
 0x12c   : > { %540 = vmatmul.mubr.bf16.vlgmr.msra.gmra.mrb[0].mxu0 %v395_v45 }
 0x12d   : > { %v1136_v43 = vpop.eup %1135  ;;  %1141 = vrsqrt.f32 %v372_v46  ;;  %549 = vmatprep.mubr.bf16.mxu0 %v1310_v30  ;;  %v366_v50 = vmax.f32 %v359_v47, 0.0 }
 0x12e   : > { %v390_v53 = vmul.f32 %v1136_v43, %v383_v48 }
 0x12f   : > { %v1138_v51 = vpop.eup %1137  ;;  %v373_v52 = vadd.f32 1e-05, %v366_v50 }
 0x130   : > { %v391_v54 = vmul.f32 %v1138_v51, %v384_v49 }
 0x131   : > { %1143 = vrsqrt.f32 %v373_v52 }
 0x132   : > { %v396_v55 = vpack.c.bf16 %v391_v54, %v390_v53 }
 0x134   : > { %550 = vmatmul.mubr.bf16.gmra.mrb[4].mxu0 %v396_v55 }
 0x135   : > { %v1140_v56 = vpop.eup %1139  ;;  %559 = vmatprep.mubr.bf16.mxu0 %v1310_v30 }
 0x136   : > { %v392_v62 = vmul.f32 %v1140_v56, %v385_v58 }
 0x137   : > { %v1142_v60 = vpop.eup %1141 }
 0x138   : > { %v393_v57 = vmul.f32 %v1142_v60, %v386_v59 }
 0x13a   : > { %v397_v63 = vpack.c.bf16 %v393_v57, %v392_v62 }
 0x13b   : > { %v1144_v61 = vpop.eup %1143 }
 0x13c   : > { %560 = vmatmul.mubr.bf16.gmra.mrb[8].mxu0 %v397_v63  ;;  %v394_v3 = vmul.f32 %v1144_v61, %v387_v2 }
 0x13d   : > { %569 = vmatprep.mubr.bf16.mxu0 %v1310_v30  ;;  %v415_v30 = vld [vmem:[%s1670_s2] sm:$0x3] }
 0x13e   : > { %v398_v4 = vpack.c.bf16 %v394_v3, %v394_v3  ;;  %v420_v19 = vrot.slane %v415_v30, %v419_v16  ;;  %v424_v20 = vrot.slane %v415_v30, %v423_v17  ;;  %v954_v30 = vld [vmem:[%s1672_s4] ss:$0 sm:$0xff] }
 0x144   : > { %570 = vmatmul.mubr.bf16.gmra.mrb[12].mxu0 %v398_v4 }
 0x1ff   : > { %v541_v21 = vpop.f32.mrb[0].mxu0 }
 0x200   : > { %v542_v22 = vadd.f32 %v541_v21, %v420_v19  ;;  %v543_v23 = vpop.f32.mrb[1].mxu0 }
 0x201   : > { %v544_v24 = vadd.f32 %v543_v23, %v424_v20  ;;  %v545_v25 = vpop.f32.mrb[2].mxu0 }
 0x202   : > { %v546_v26 = vadd.f32 %v545_v25, %v420_v19  ;;  %v547_v27 = vpop.f32.mrb[3].mxu0  ;;  %v578_v29 = vmax.f32 %v542_v22, 0.0 }
 0x203   : > { %v548_v28 = vadd.f32 %v547_v27, %v424_v20  ;;  %v579_v32 = vmax.f32 %v544_v24, 0.0 }
 0x204   : > { %v580_v31 = vmax.f32 %v546_v26, 0.0 }
 0x205   : > { %v581_v33 = vmax.f32 %v548_v28, 0.0 }
 0x206   : > { %v592_v34 = vpack.c.bf16 %v580_v31, %v578_v29 }
 0x207   : > { %v551_v35 = vpop.f32.mrb[4].mxu0  ;;  %v593_v36 = vpack.c.bf16 %v581_v33, %v579_v32 }
 0x208   : > { %v552_v37 = vadd.f32 %v551_v35, %v420_v19  ;;  %v553_v38 = vpop.f32.mrb[5].mxu0 }
 0x209   : > { %v554_v39 = vadd.f32 %v553_v38, %v424_v20  ;;  %v555_v40 = vpop.f32.mrb[6].mxu0  ;;  %767 = vmatprep.mubr.bf16.mxu1 %v593_v36 }
 0x20a   : > { %v556_v41 = vadd.f32 %v555_v40, %v420_v19  ;;  %v557_v42 = vpop.f32.mrb[7].mxu0  ;;  %768 = vmatmul.mubr.bf16.vlgmr.msra.gmra.mrb[0].mxu1 %v592_v34  ;;  %v582_v45 = vmax.f32 %v552_v37, 0.0 }
 0x20b   : > { %v558_v44 = vadd.f32 %v557_v42, %v424_v20  ;;  %v583_v47 = vmax.f32 %v554_v39, 0.0 }
 0x20c   : > { %v584_v46 = vmax.f32 %v556_v41, 0.0 }
 0x20d   : > { %v585_v43 = vmax.f32 %v558_v44, 0.0 }
 0x20e   : > { %v594_v48 = vpack.c.bf16 %v584_v46, %v582_v45 }
 0x20f   : > { %v595_v49 = vpack.c.bf16 %v585_v43, %v583_v47  ;;  %v561_v50 = vpop.f32.mrb[8].mxu0 }
 0x210   : > { %v562_v51 = vadd.f32 %v561_v50, %v420_v19  ;;  %v563_v52 = vpop.f32.mrb[9].mxu0 }
 0x211   : > { %v564_v53 = vadd.f32 %v563_v52, %v424_v20  ;;  %v565_v54 = vpop.f32.mrb[10].mxu0  ;;  %775 = vmatprep.mubr.bf16.mxu1 %v595_v49 }
 0x212   : > { %v566_v55 = vadd.f32 %v565_v54, %v420_v19  ;;  %v567_v56 = vpop.f32.mrb[11].mxu0  ;;  %776 = vmatmul.mubr.bf16.gmra.mrb[4].mxu1 %v594_v48  ;;  %v586_v59 = vmax.f32 %v562_v51, 0.0 }
 0x213   : > { %v568_v58 = vadd.f32 %v567_v56, %v424_v20  ;;  %v587_v62 = vmax.f32 %v564_v53, 0.0 }
 0x214   : > { %v588_v60 = vmax.f32 %v566_v55, 0.0 }
 0x215   : > { %v589_v57 = vmax.f32 %v568_v58, 0.0 }
 0x216   : > { %v596_v63 = vpack.c.bf16 %v588_v60, %v586_v59 }
 0x217   : > { %v597_v61 = vpack.c.bf16 %v589_v57, %v587_v62  ;;  %v571_v2 = vpop.f32.mrb[12].mxu0 }
 0x218   : > { %v572_v3 = vadd.f32 %v571_v2, %v420_v19  ;;  %v573_v4 = vpop.f32.mrb[13].mxu0 }
 0x219   : > { %v574_v5 = vadd.f32 %v573_v4, %v424_v20  ;;  %v575_v8 = vpop.f32.mrb[14].mxu0  ;;  %783 = vmatprep.mubr.bf16.mxu1 %v597_v61 }
 0x21a   : > { %v576_v9 = vpop.f32.mrb[15].mxu0  ;;  %784 = vmatmul.mubr.bf16.gmra.mrb[8].mxu1 %v596_v63  ;;  %v590_v13 = vmax.f32 %v572_v3, 0.0 }
 0x21b   : > { %v591_v12 = vmax.f32 %v574_v5, 0.0 }
 0x21c   : > { %v598_v15 = vpack.c.bf16 %v590_v13, %v590_v13 }
 0x21d   : > { %v599_v14 = vpack.c.bf16 %v591_v12, %v591_v12 }
 0x21f   : > { %791 = vmatprep.mubr.bf16.mxu1 %v599_v14 }
 0x222   : > { %792 = vmatmul.mubr.bf16.gmra.mrb[12].mxu1 %v598_v15 }
 0x2dd   : > { %v996_v16 = vpop.f32.mrb[0].mxu1 }
 0x2de   : > { %v997_v17 = vpop.f32.mrb[1].mxu1 }
 0x2df   : > { %v998_v19 = vadd.f32 %v997_v17, %v996_v16  ;;  %v999_v21 = vpop.f32.mrb[2].mxu1 }
 0x2e0   : > { %v1000_v20 = vpop.f32.mrb[3].mxu1 }
 0x2e1   : > { %v770_v22 = vadd.f32 %v998_v19, %v954_v30  ;;  %v1001_v23 = vadd.f32 %v1000_v20, %v999_v21 }
 0x2e3   : > { %v799_v24 = vadd.f32 %v770_v22, %v1530_v0  ;;  %v773_v25 = vadd.f32 %v1001_v23, %v954_v30 }
 0x2e5   : > { %806 = vst [vmem:[%s1591_s26] sm:$0xff] %v799_v24  ;;  %v800_v26 = vadd.f32 %v773_v25, %v1533_v1  ;;  %v1002_v27 = vpop.f32.mrb[4].mxu1 }
 0x2e6   : > { %v1003_v28 = vpop.f32.mrb[5].mxu1 }
 0x2e7   : > { %807 = vst [vmem:[%s1591_s26 + $0x8] sm:$0xff] %v800_v26  ;;  %v1004_v29 = vadd.f32 %v1003_v28, %v1002_v27  ;;  %v1005_v31 = vpop.f32.mrb[6].mxu1 }
 0x2e8   : > { %v1006_v32 = vpop.f32.mrb[7].mxu1 }
 0x2e9   : > { %v778_v33 = vadd.f32 %v1004_v29, %v954_v30  ;;  %v1007_v0 = vadd.f32 %v1006_v32, %v1005_v31 }
 0x2eb   : > { %v801_v34 = vadd.f32 %v778_v33, %v1541_v6  ;;  %v781_v35 = vadd.f32 %v1007_v0, %v954_v30 }
 0x2ed   : > { %808 = vst [vmem:[%s1591_s26 + $0x10] sm:$0xff] %v801_v34  ;;  %v802_v36 = vadd.f32 %v781_v35, %v1545_v7  ;;  %v1008_v37 = vpop.f32.mrb[8].mxu1 }
 0x2ee   : > { %v1009_v38 = vpop.f32.mrb[9].mxu1 }
 0x2ef   : > { %809 = vst [vmem:[%s1591_s26 + $0x18] sm:$0xff] %v802_v36  ;;  %v1010_v1 = vadd.f32 %v1009_v38, %v1008_v37  ;;  %v1011_v39 = vpop.f32.mrb[10].mxu1 }
 0x2f0   : > { %v1012_v40 = vpop.f32.mrb[11].mxu1 }
 0x2f1   : > { %v786_v41 = vadd.f32 %v1010_v1, %v954_v30  ;;  %v1013_v42 = vadd.f32 %v1012_v40, %v1011_v39 }
 0x2f3   : > { %v803_v44 = vadd.f32 %v786_v41, %v1554_v10  ;;  %v789_v45 = vadd.f32 %v1013_v42, %v954_v30 }
 0x2f5   : > { %810 = vst [vmem:[%s1591_s26 + $0x20] sm:$0xff] %v803_v44  ;;  %v804_v6 = vadd.f32 %v789_v45, %v1557_v11  ;;  %v1014_v46 = vpop.f32.mrb[12].mxu1 }
 0x2f6   : > { %v1015_v47 = vpop.f32.mrb[13].mxu1 }
 0x2f7   : > { %811 = vst [vmem:[%s1591_s26 + $0x28] sm:$0xff] %v804_v6  ;;  %v1016_v7 = vadd.f32 %v1015_v47, %v1014_v46  ;;  %v1017_v43 = vpop.f32.mrb[14].mxu1  ;;  %820 = sbr.rel (!%p1689_p8) target bundleno = 794 (0x31a), region = 56 }
 0x2f8   : > { %v1018_v48 = vpop.f32.mrb[15].mxu1 }
 0x2f9   : > { %v794_v49 = vadd.f32 %v1016_v7, %v954_v30 }
 0x2fb   : > { %v805_v50 = vadd.f32 %v794_v49, %v1566_v18 }
 0x2fd   : > { %812 = vst [vmem:[%s1591_s26 + $0x30] sm:$0xff] %v805_v50 }
 0x2fe   : > { %s1699_s10 = smov (!%p823_p9, %s822_s10), 7 }
 0x2ff   : > { %s1610_s12 = sshll.u32 %s1699_s10, 7 }
 0x300   : > { %s827_s28 = ssub.s32 896, %s1610_s12 }
 0x301   : > { %828 = vsyncadd %s814_s8, %s827_s28  ;;  %p972_p10 = scmp.ne.s32.totalorder %s1610_s12, 0  ;;  %s979_s30 = smul.u32 896, %s1365_s22 }
 0x302   : > { %s833_s9 = sshll.u32 %s1591_s26, 4  ;;  %s1311_s16 = smov [#allocation8]   ;;  %s1623_s9 = int_to_ptr.vmem [resolvable:$true] %s833_s9 }
 0x303   : > { %s1621_s14 = scalar_lea.hbm %s1673_s5, %s979_s30  ;;  %s1229_s15 = scalar_lea.vmem %s1623_s9, %s1610_s12 }
 0x304   : > { %p1230_p1 = scmp.ne.s32.totalorder %s1623_s9, %s1229_s15  ;;  %s1233_s29 = sshll.u32 %s1311_s16, 4  ;;  %s1234_s29 = int_to_ptr.vmem [resolvable:$false] %s1233_s29 }
 0x305   : > { %s1235_s22 = scalar_lea.vmem %s1234_s29, 1792  ;;  %p1236_p5 = scmp.lt.s32.totalorder %s1623_s9, %s1234_s29 }
 0x306   : > { %p1231_p4 = pnand %p1230_p1, %p972_p10  ;;  %p1237_p6 = scmp.lt.s32.totalorder %s1235_s22, %s1229_s15 }
 0x308   : > { %p1232_p3 = pneg %p1231_p4  ;;  %p1238_p11 = por %p1237_p6, %p1236_p5 }
 0x30a   : > { %p1239_p13 = pnand %p1238_p11, %p1232_p3 }
 0x30c   : > { %1242 = shalt.err (!%p1239_p13)
}
 0x30d   : > { %s1243_s7 = scalar_lea.hbm %s1621_s14, %s1610_s12  ;;  %s1247_s26 = scalar_lea.hbm %s1673_s5, 3200 }
 0x30e   : > { %p1244_p12 = scmp.ne.s32.totalorder %s1621_s14, %s1243_s7  ;;  %p1248_p7 = scmp.lt.u32.totalorder %s1621_s14, %s1673_s5 }
 0x30f   : > { %p1249_p8 = scmp.lt.u32.totalorder %s1247_s26, %s1243_s7  ;;  %p1251_p1 = scmp.lt.u32.totalorder %s1243_s7, %s1621_s14 }
 0x310   : > { %p1245_p0 = pnand %p1244_p12, %p972_p10 }
 0x311   : > { %p1250_p9 = por %p1249_p8, %p1248_p7 }
 0x312   : > { %p1246_p2 = pneg %p1245_p0 }
 0x313   : > { %p1252_p4 = por %p1251_p1, %p1250_p9 }
 0x315   : > { %p1253_p3 = pnand %p1252_p4, %p1246_p2 }
 0x317   : > { %1256 = shalt.err (!%p1253_p3)
}
 0x318   : > { %s1312_s28 = smov 128   ;;  %s1313_s30 = smov 8  }
 0x319   : > { %839 = dma.vmem_to_hbm [thread:$0]  (%p972_p10), %s1623_s9, %s1610_s12, %s1621_s14, %s814_s8, %s1312_s28, %s1312_s28, %s1313_s30  }
 0x31a PF: > { %p1047_p5 = scmp.ge.s32.totalorder %s1299_s21, 2  ;;  %s848_s27 = sand.u32 1, %s1287_s18  }
 0x31b   : > { %p1690_p6 = scmp.ne.s32.totalorder %s1681_s6, 0  ;;  %s849_s11 = scalar_lea.sflag [#allocation4], %s848_s27 }
 0x31d   : > { %p1040_p11 = pnand %p1047_p5, %p1690_p6 }
 0x31f   : > { %1282 = dma.done.wait (!%p1040_p11), %s849_s11, 896  }
 0x320   : > { %1284 = vsyncadd (!%p1040_p11), %s849_s11, 4294966400  ;;  %s1691_s15 = sld [smem:[#allocation12_spill]]  ;;  %p19_p13 = scmp.ge.s32.totalorder %s1369_s24, 6  }
 0x321   : > { %s1692_s18 = smov %s1291_s19  ;;  %s1693_s19 = smov %s1295_s20 }
 0x322   : > { %s1695_s21 = smov %s1369_s24  ;;  %21 = sbr.rel (!%p19_p13) target bundleno = 6 (0x6), region = 93 }
 0x326   : > { %s1694_s20 = smov %s1691_s15 }
 0x329   :  { %854 = vsyncpa [#allocation3], 1 }
 0x32a   :  { %856 = vsyncpa [#allocation3 + $0x1], 1 }
 0x32b   :  { %857 = vsyncpa [#allocation6], 1 }
 0x32c   :  { %858 = vsyncpa [#allocation4], 1 }
 0x32d   :  { %860 = vsyncpa [#allocation4 + $0x1], 1 }

</bundles_post_ra>
